<compile_context>
chip_gen: v6e
topology: v6e:2x2x1
jax: 0.10.0
libtpu: 0.0.40
codegen_flags: <defaults>
</compile_context>

<pallas_src>
import math
import functools

import jax
import jax.numpy as jnp
from jax import lax
from jax.experimental import pallas as pl
from jax.experimental.pallas import tpu as pltpu


# ---------------------------------------------------------------------------
# kernels
# ---------------------------------------------------------------------------

# contract the last dim of both operands  =>  x @ W^T  with W in (N, K) layout
_DN_TRANS_B = (((1,), (1,)), ((), ()))


def _k1_bias_kernel(x_ref, w_ref, b_ref, o_ref):
    """Single K step: grid (gm, gn), no scratch accumulator."""
    acc = lax.dot_general(x_ref[...], w_ref[...], _DN_TRANS_B,
                          preferred_element_type=jnp.float32)
    o_ref[...] = (acc + b_ref[...]).astype(o_ref.dtype)


def _k1_nobias_kernel(x_ref, w_ref, o_ref):
    acc = lax.dot_general(x_ref[...], w_ref[...], _DN_TRANS_B,
                          preferred_element_type=jnp.float32)
    o_ref[...] = acc.astype(o_ref.dtype)


def _acc_bias_kernel(x_ref, w_ref, b_ref, o_ref, acc_ref):
    """K-accumulating: grid (gm, gn, gk), f32 scratch accumulator."""
    k = pl.program_id(2)
    prod = lax.dot_general(x_ref[...], w_ref[...], _DN_TRANS_B,
                           preferred_element_type=jnp.float32)

    @pl.when(k == 0)
    def _():
        acc_ref[...] = prod            # direct write: no zero-init store+load

    @pl.when(k > 0)
    def _():
        acc_ref[...] += prod

    @pl.when(k == pl.num_programs(2) - 1)
    def _():
        o_ref[...] = (acc_ref[...] + b_ref[...]).astype(o_ref.dtype)


def _acc_nobias_kernel(x_ref, w_ref, o_ref, acc_ref):
    k = pl.program_id(2)
    prod = lax.dot_general(x_ref[...], w_ref[...], _DN_TRANS_B,
                           preferred_element_type=jnp.float32)

    @pl.when(k == 0)
    def _():
        acc_ref[...] = prod

    @pl.when(k > 0)
    def _():
        acc_ref[...] += prod

    @pl.when(k == pl.num_programs(2) - 1)
    def _():
        o_ref[...] = acc_ref[...].astype(o_ref.dtype)


# ---------------------------------------------------------------------------
# tiling helpers
# ---------------------------------------------------------------------------

def _round_up(v, m):
    return (v + m - 1) // m * m


def _cdiv(a, b):
    return (a + b - 1) // b


def _sublane(*dtypes):
    """Native second-to-last-dim packing: 8 (f32) / 16 (bf16) / 32 (int8)."""
    it = min(jnp.dtype(d).itemsize for d in dtypes)
    return max(8, 32 // it)


def _largest_aligned_divisor(padded_dim, want, align=128):
    """Largest multiple of `align` that divides `padded_dim` and is <= max(want, align)."""
    q = padded_dim // align
    want_q = max(1, want // align)
    best = 1
    for d in range(1, q + 1):
        if q % d == 0 and d <= want_q:
            best = d
    return best * align


def _pick_m_tile(m, want, align):
    """Aligned, near-even split of M: waste is at most (blocks * align) rows."""
    m_a = _round_up(max(m, 1), align)
    if m_a <= want:
        return m_a
    nb = _cdiv(m_a, want)
    return _round_up(_cdiv(m_a, nb), align)


# User-buffer budget: keeps the requested vmem_limit <= ~48 MiB, which leaves
# >= 16 MiB headroom even on v7x's 64 MiB physical VMEM per TensorCore.
_VMEM_BUDGET = 40 * 1024 * 1024


def _working_set(tm_e, tn_e, tk_e, x_it, w_it, o_it, has_bias):
    ws = 2 * tm_e * tk_e * x_it          # x tiles (pipeline double-buffered)
    ws += 2 * tn_e * tk_e * w_it         # W tiles (pipeline double-buffered)
    ws += 2 * tm_e * tn_e * o_it         # output tiles (double-buffered)
    ws += tm_e * tn_e * 4                # f32 accumulator (conservative)
    if has_bias:
        ws += 2 * tn_e * 4
    return ws


def _vmem_limit(ws):
    # Explicit scoped-VMEM request (v5e default is only 16 MiB); with the
    # budget above this stays <= 48 MiB, safe on v7x's 64 MiB VMEM.
    return int(min(max(ws + (8 << 20), 32 << 20), 96 << 20))


# ---------------------------------------------------------------------------
# forward
# ---------------------------------------------------------------------------

def prepare_alt_backward_linear(weight_forward, bias=None, compute_dtype=None):
    """Pad (and optionally cast) the parameters ONCE, outside the hot path.

    Returns (w_padded[(Np,Kp)], bias_padded[(1,Np)] or None) with Np,Kp
    rounded up to 128.  Padding is a property of the parameter, not the
    activation — pay the N*K copy once, not per forward call.
    """
    N, K = weight_forward.shape
    Np, Kp = _round_up(N, 128), _round_up(K, 128)
    w = weight_forward if compute_dtype is None else weight_forward.astype(compute_dtype)
    w_padded = jnp.pad(w, ((0, Np - N), (0, Kp - K)))
    b_padded = None
    if bias is not None:
        b_padded = jnp.pad(bias.astype(jnp.float32), (0, Np - N)).reshape(1, Np)
    return w_padded, b_padded


@functools.partial(
    jax.jit, static_argnames=("out_features", "tm", "tn", "tk", "compute_dtype"))
def alt_backward_linear_forward_prepared(x, w_padded, bias_padded=None, *,
                                         out_features, tm=512, tn=512, tk=1024,
                                         compute_dtype=None):
    """y = x @ W.T + b using pre-padded parameters from prepare_alt_backward_linear."""
    orig_shape = x.shape
    K = orig_shape[-1]
    x2d = x.reshape(-1, K)
    M = x2d.shape[0]
    Np, Kp = w_padded.shape
    assert Kp >= K, "prepared weight has fewer in_features than x"
    assert Np >= out_features, "prepared weight has fewer out_features than requested"

    out_dtype = x.dtype
    cd = jnp.dtype(compute_dtype) if compute_dtype is not None else jnp.dtype(x2d.dtype)
    x2d = x2d.astype(cd)
    w = w_padded.astype(cd)              # no-op when prepared in the compute dtype
    has_bias = bias_padded is not None

    x_it = cd.itemsize
    w_it = jnp.dtype(w.dtype).itemsize
    o_it = jnp.dtype(out_dtype).itemsize
    sub = _sublane(cd, out_dtype)        # dtype-aware sublane multiple for the M dim

    # ---- tile selection: aligned divisors of the padded dims (no whole-tile
    # M/N padding), clamped so the working set fits the VMEM budget. ----------
    tm_eff = _pick_m_tile(M, tm, sub)
    tn_eff = _largest_aligned_divisor(Np, tn, 128)
    tk_eff = _largest_aligned_divisor(Kp, tk, 128)

    prev = None
    while _working_set(tm_eff, tn_eff, tk_eff, x_it, w_it, o_it, has_bias) > _VMEM_BUDGET:
        cur = (tm_eff, tn_eff, tk_eff)
        if cur == prev:
            break
        prev = cur
        if tk_eff > 128:
            tk_eff = _largest_aligned_divisor(Kp, tk_eff // 2, 128)
        elif tn_eff > 128:
            tn_eff = _largest_aligned_divisor(Np, tn_eff // 2, 128)
        elif tm_eff > sub:
            tm_eff = _pick_m_tile(M, max(sub, tm_eff // 2), sub)
        else:
            break

    Mp = _round_up(max(M, 1), tm_eff)
    gm, gn, gk = Mp // tm_eff, Np // tn_eff, Kp // tk_eff

    # ---- guarantee >= 2 blocks on a parallel axis so both v7x TensorCores
    # get work (split N: weight splits cleanly, only the small x is re-read). --
    if gm * gn == 1 and Np >= 256:
        tn_eff = _largest_aligned_divisor(Np, Np // 2, 128)
        gn = Np // tn_eff

    # ---- per-call activation padding only (<= sub-1 rows, <= 127 K cols) -----
    pad_r, pad_c = Mp - M, Kp - K
    if pad_r or pad_c:
        x2d = jnp.pad(x2d, ((0, pad_r), (0, pad_c)))

    ws = _working_set(tm_eff, tn_eff, tk_eff, x_it, w_it, o_it, has_bias)

    if gk == 1:
        # Single K step: no scratch accumulator; x block stays resident across
        # the N axis when gm == 1 (small-batch fast path falls out of this).
        in_specs = [pl.BlockSpec((tm_eff, Kp), lambda i, j: (i, 0)),
                    pl.BlockSpec((tn_eff, Kp), lambda i, j: (j, 0))]
        operands = [x2d, w]
        if has_bias:
            in_specs.append(pl.BlockSpec((1, tn_eff), lambda i, j: (0, j)))
            operands.append(bias_padded)
        out = pl.pallas_call(
            _k1_bias_kernel if has_bias else _k1_nobias_kernel,
            out_shape=jax.ShapeDtypeStruct((Mp, Np), out_dtype),
            grid_spec=pltpu.PrefetchScalarGridSpec(
                num_scalar_prefetch=0,
                grid=(gm, gn),
                in_specs=in_specs,
                out_specs=pl.BlockSpec((tm_eff, tn_eff), lambda i, j: (i, j))),
            compiler_params=pltpu.CompilerParams(
                dimension_semantics=("parallel", "parallel"),
                vmem_limit_bytes=_vmem_limit(ws)),
        )(*operands)
    else:
        in_specs = [pl.BlockSpec((tm_eff, tk_eff), lambda i, j, k: (i, k)),
                    pl.BlockSpec((tn_eff, tk_eff), lambda i, j, k: (j, k))]
        operands = [x2d, w]
        if has_bias:
            in_specs.append(pl.BlockSpec((1, tn_eff), lambda i, j, k: (0, j)))
            operands.append(bias_padded)
        out = pl.pallas_call(
            _acc_bias_kernel if has_bias else _acc_nobias_kernel,
            out_shape=jax.ShapeDtypeStruct((Mp, Np), out_dtype),
            grid_spec=pltpu.PrefetchScalarGridSpec(
                num_scalar_prefetch=0,
                grid=(gm, gn, gk),
                in_specs=in_specs,
                out_specs=pl.BlockSpec((tm_eff, tn_eff), lambda i, j, k: (i, j)),
                scratch_shapes=[pltpu.VMEM((tm_eff, tn_eff), jnp.float32)]),
            compiler_params=pltpu.CompilerParams(
                dimension_semantics=("parallel", "parallel", "arbitrary"),
                vmem_limit_bytes=_vmem_limit(ws)),
        )(*operands)

    out = out[:M, :out_features]
    return out.reshape(*orig_shape[:-1], out_features)


def alt_backward_linear_forward(x, weight_forward, bias=None, *,
                                tm=512, tn=512, tk=1024, compute_dtype=None):
    """Convenience wrapper: pads the weight per call. For repeated use, call
    prepare_alt_backward_linear() once and use ..._forward_prepared()."""
    w_padded, b_padded = prepare_alt_backward_linear(weight_forward, bias, compute_dtype)
    return alt_backward_linear_forward_prepared(
        x, w_padded, b_padded, out_features=weight_forward.shape[0],
        tm=tm, tn=tn, tk=tk, compute_dtype=compute_dtype)


# ---------------------------------------------------------------------------
# parameter init (mirror of AltBackwardLinear.reset_parameters)
# ---------------------------------------------------------------------------

def init_alt_backward_linear_params(key, in_features, out_features,
                                    backward_type="feedback_alignment"):
    """kaiming_uniform_(a=sqrt(5)) on (out,in) => U(-1/sqrt(fan_in), 1/sqrt(fan_in));
    bias => U(-1/sqrt(fan_in), 1/sqrt(fan_in))."""
    kf, kb, kbias = jax.random.split(key, 3)
    bound = 1.0 / math.sqrt(in_features)
    weight_forward = jax.random.uniform(
        kf, (out_features, in_features), jnp.float32, -bound, bound)
    if backward_type == "feedback_alignment":
        weight_backward = jax.random.uniform(
            kb, (out_features, in_features), jnp.float32, -bound, bound)
    elif backward_type == "sign_symmetry":
        weight_backward = jnp.sign(weight_forward)
    else:
        raise NotImplementedError(backward_type)
    bias = jax.random.uniform(kbias, (out_features,), jnp.float32, -bound, bound)
    # weight_backward only participates in the custom backward; the forward
    # pass never reads it.
    return weight_forward, weight_backward, bias


# ---------------------------------------------------------------------------
# test
# ---------------------------------------------------------------------------

if __name__ == "__main__":
    key = jax.random.PRNGKey(0)
    k_x, k_p, k_rest = jax.random.split(key, 3)

    # --- 1) small, unaligned shapes; 3-D leading batch; prepared params -------
    B0, B1, in_f, out_f = 2, 4, 96, 80
    x = jax.random.normal(k_x, (B0, B1, in_f), jnp.float32)
    w_f, w_b, b = init_alt_backward_linear_params(
        k_p, in_f, out_f, backward_type="feedback_alignment")

    w_pad, b_pad = prepare_alt_backward_linear(w_f, b)          # pad once
    y = jax.block_until_ready(alt_backward_linear_forward_prepared(
        x, w_pad, b_pad, out_features=out_f))
    y_ref = jnp.einsum("abk,nk->abn", x, w_f) + b
    assert y.shape == (B0, B1, out_f)
    assert jnp.allclose(y, y_ref, atol=1e-3, rtol=1e-3)

    # --- no-bias path via the convenience wrapper ------------------------------
    y_nb = jax.block_until_ready(alt_backward_linear_forward(x, w_f, None))
    assert jnp.allclose(y_nb, jnp.einsum("abk,nk->abn", x, w_f),
                        atol=1e-3, rtol=1e-3)

    # --- 2) multi-block grid with K accumulation, non-divisible M/N/K ---------
    k_x2, k_w2, k_b2 = jax.random.split(k_rest, 3)
    M2, K2, N2 = 260, 320, 200
    x2 = jax.random.normal(k_x2, (M2, K2), jnp.float32)
    w2 = jax.random.normal(k_w2, (N2, K2), jnp.float32) * (1.0 / math.sqrt(K2))
    b2 = jax.random.normal(k_b2, (N2,), jnp.float32)
    y2 = jax.block_until_ready(alt_backward_linear_forward(
        x2, w2, b2, tm=128, tn=128, tk=128))
    y2_ref = x2 @ w2.T + b2[None, :]
    assert y2.shape == (M2, N2)
    assert jnp.allclose(y2, y2_ref, atol=1e-3, rtol=1e-3)

    # --- 3) opt-in bf16 compute path (f32 accumulation), loose tolerance ------
    w_pad16, b_pad16 = prepare_alt_backward_linear(w_f, b, compute_dtype=jnp.bfloat16)
    y16 = jax.block_until_ready(alt_backward_linear_forward_prepared(
        x, w_pad16, b_pad16, out_features=out_f, compute_dtype=jnp.bfloat16))
    assert y16.shape == (B0, B1, out_f)
    assert jnp.allclose(y16, y_ref, atol=5e-2, rtol=5e-2)

    print("KERNEL_OK")
</pallas_src>

<mosaic_0001>
module attributes {stable_mosaic.version = 11 : i64} {
  func.func @_k1_bias_kernel(%arg0: i32, %arg1: i32, %arg2: memref<8x128xf32, #tpu.memory_space<vmem>>, %arg3: memref<128x128xf32, #tpu.memory_space<vmem>>, %arg4: memref<1x128xf32, #tpu.memory_space<vmem>>, %arg5: memref<8x128xf32, #tpu.memory_space<vmem>>) attributes {dimension_semantics = [#tpu.dimension_semantics<parallel>, #tpu.dimension_semantics<parallel>], iteration_bounds = array<i64: 1, 1>, scalar_prefetch = 0 : i64, scratch_operands = 0 : i64, tpu.core_type = #tpu.core_type<tc>, window_params = [{transform_indices = @transform_0, window_bounds = array<i64: 8, 128>}, {transform_indices = @transform_1, window_bounds = array<i64: 128, 128>}, {transform_indices = @transform_2, window_bounds = array<i64: 1, 128>}, {transform_indices = @transform_3, window_bounds = array<i64: 8, 128>}]} {
    %c0 = arith.constant 0 : index
    %c0_0 = arith.constant 0 : index
    %0 = vector.load %arg2[%c0, %c0_0] : memref<8x128xf32, #tpu.memory_space<vmem>>, vector<8x128xf32>
    %c0_1 = arith.constant 0 : index
    %c0_2 = arith.constant 0 : index
    %1 = vector.load %arg3[%c0_1, %c0_2] : memref<128x128xf32, #tpu.memory_space<vmem>>, vector<128x128xf32>
    %cst = arith.constant dense<0.000000e+00> : vector<8x128xf32>
    %2 = tpu.matmul %0, %1, %cst {dimension_numbers = #tpu.dot_dimension_numbers<[1], [1], [0], [0], [0, 0, 1, 0], [], []>} : vector<8x128xf32>, vector<128x128xf32>, vector<8x128xf32> -> vector<8x128xf32>
    %c0_3 = arith.constant 0 : index
    %c0_4 = arith.constant 0 : index
    %3 = vector.load %arg4[%c0_3, %c0_4] : memref<1x128xf32, #tpu.memory_space<vmem>>, vector<1x128xf32>
    %4 = vector.broadcast %3 : vector<1x128xf32> to vector<8x128xf32>
    %5 = arith.addf %2, %4 : vector<8x128xf32>
    %c0_5 = arith.constant 0 : index
    %c0_6 = arith.constant 0 : index
    %6 = vector.load %arg5[%c0_5, %c0_6] : memref<8x128xf32, #tpu.memory_space<vmem>>, vector<8x128xf32>
    tpu.vector_store %arg5[%c0_5, %c0_6], %5 {strides = array<i32>} : memref<8x128xf32, #tpu.memory_space<vmem>>, vector<8x128xf32>,
    return
  }
  func.func @transform_0(%arg0: i32, %arg1: i32) -> (i32, i32) {
    %c0_i32 = arith.constant 0 : i32
    %c0_i32_0 = arith.constant 0 : i32
    return %arg0, %c0_i32 : i32, i32
  }
  func.func @transform_1(%arg0: i32, %arg1: i32) -> (i32, i32) {
    %c0_i32 = arith.constant 0 : i32
    %c0_i32_0 = arith.constant 0 : i32
    return %arg1, %c0_i32 : i32, i32
  }
  func.func @transform_2(%arg0: i32, %arg1: i32) -> (i32, i32) {
    %c0_i32 = arith.constant 0 : i32
    %c0_i32_0 = arith.constant 0 : i32
    return %c0_i32, %arg1 : i32, i32
  }
  func.func @transform_3(%arg0: i32, %arg1: i32) -> (i32, i32) {
    %c0_i32 = arith.constant 0 : i32
    return %arg0, %arg1 : i32, i32
  }
}

</mosaic_0001>

<bundles_post_ra>
// kernel: alt_backward_linear_forward_prepared.1
= control target key start
LH: loop header
LB: loop body
LE: loop exit
PB: predicated region body
PF: predicated region fallthrough
CT: control target
= control target key end

     0   :  { %8 = vsyncpa [#allocation3], 0  ;;  %s280_s0 = inlined_call_operand.vmem [shape: f32[8,128], index: 0, kind: input, shape index: {}]   ;;  %s281_s1 = inlined_call_operand.hbm [shape: f32[128,128], index: 1, kind: input, shape index: {}]   ;;  %s282_s2 = inlined_call_operand.vmem [shape: f32[1,128], index: 2, kind: input, shape index: {}]   ;;  %s283_s3 = inlined_call_operand.hbm [shape: f32[8,128], index: 3, kind: output, shape index: {}]  }
   0x1   :  { %9 = vsyncpa [#allocation4], 0  ;;  %s242_s12 = smov [#allocation2]  }
   0x2   :  { %s17_s13 = sshll.u32 %s242_s12, 4  ;;  %s18_s13 = int_to_ptr.vmem [resolvable:$true] %s17_s13 }
   0x3   :  { %s206_s14 = scalar_lea.vmem %s18_s13, 2048  ;;  %p211_p1 = scmp.lt.s32.totalorder %s18_s13, %s18_s13 }
   0x4   :  { %p207_p0 = scmp.ne.s32.totalorder %s18_s13, %s206_s14  ;;  %p212_p2 = scmp.lt.s32.totalorder %s206_s14, %s206_s14 }
   0x6   :  { %p213_p3 = por %p212_p2, %p211_p1 }
   0x8   :  { %p214_p4 = pnand %p213_p3, %p207_p0 }
   0xa   :  { %217 = shalt.err (!%p214_p4)
}
   0xb   :  { %s243_s15 = smov 128   ;;  %s244_s16 = smov 8  }
   0xc   :  { %23 = dma.hbm_to_vmem [thread:$0]  %s281_s1, 2048, %s18_s13, [#allocation3], %s243_s15, %s243_s15, %s244_s16  }
   0xd   :  { %238 = dma.done.wait [#allocation3], 2048  }
   0xe   :  { %239 = vsyncadd [#allocation3], 4294965248  ;;  %v245_v0 = vmov 0.0   ;;  %vm246_vm0 = vmmov 0   ;;  %v45_v1 = vld [vmem:[#allocation2 + $0x78] sm:$0xff]  ;;  %v44_v2 = vld [vmem:[#allocation2 + $0x70] sm:$0xff] }
   0xf   :  { %157 = vmatprep.subr.mxu0 %v245_v0  ;;  %189 = vmatprep.mubr.msk.f32.mxu0 %vm246_vm0, %v245_v0  ;;  %v43_v3 = vld [vmem:[#allocation2 + $0x68] sm:$0xff]  ;;  %v42_v4 = vld [vmem:[#allocation2 + $0x60] sm:$0xff]  ;;  %v41_v5 = vld [vmem:[#allocation2 + $0x58] sm:$0xff]  ;;  %s247_s22 = smov [#allocation5]  }
  0x10   :  { %158 = vmatpush3.xpose.msra.mxu0 %v45_v1  ;;  %v40_v6 = vld [vmem:[#allocation2 + $0x50] sm:$0xff]  ;;  %v39_v7 = vld [vmem:[#allocation2 + $0x48] sm:$0xff]  ;;  %v38_v8 = vld [vmem:[#allocation2 + $0x40] sm:$0xff]  ;;  %s130_s23 = sshll.u32 %s247_s22, 4  ;;  %s131_s23 = int_to_ptr.vmem [resolvable:$true] %s130_s23 }
  0x11   :  { %159 = vmatprep.subr.mxu0 %v245_v0  ;;  %v37_v9 = vld [vmem:[#allocation2 + $0x38] sm:$0xff]  ;;  %v36_v10 = vld [vmem:[#allocation2 + $0x30] sm:$0xff]  ;;  %v35_v11 = vld [vmem:[#allocation2 + $0x28] sm:$0xff]  ;;  %s218_s24 = scalar_lea.vmem %s131_s23, 128  ;;  %p223_p6 = scmp.lt.s32.totalorder %s131_s23, %s131_s23 }
  0x12   :  { %v34_v12 = vld [vmem:[#allocation2 + $0x20] sm:$0xff]  ;;  %v33_v13 = vld [vmem:[#allocation2 + $0x18] sm:$0xff]  ;;  %v32_v14 = vld [vmem:[#allocation2 + $0x10] sm:$0xff]  ;;  %p219_p5 = scmp.ne.s32.totalorder %s131_s23, %s218_s24  ;;  %p224_p7 = scmp.lt.s32.totalorder %s218_s24, %s218_s24 }
  0x13   :  { %v31_v15 = vld [vmem:[#allocation2 + $0x8] sm:$0xff]  ;;  %v30_v16 = vld [vmem:[#allocation2] sm:$0xff] }
  0x14   :  { %160 = vmatpush3.xpose.msra.mxu0 %v44_v2  ;;  %v29_v17 = vld [vmem:[%s280_s0] sm:$0xff]  ;;  %p225_p8 = por %p224_p7, %p223_p6 }
  0x15   :  { %161 = vmatprep.subr.mxu0 %v245_v0  ;;  %v139_v18 = vld [vmem:[%s282_s2] ss:$0 sm:$0xff] }
  0x16   :  { %p226_p9 = pnand %p225_p8, %p219_p5 }
  0x18   :  { %162 = vmatpush3.xpose.msra.mxu0 %v43_v3 }
  0x19   :  { %163 = vmatprep.subr.mxu0 %v245_v0 }
  0x1c   :  { %164 = vmatpush3.xpose.msra.mxu0 %v42_v4 }
  0x1d   :  { %165 = vmatprep.subr.mxu0 %v245_v0 }
  0x20   :  { %166 = vmatpush3.xpose.msra.mxu0 %v41_v5 }
  0x21   :  { %167 = vmatprep.subr.mxu0 %v245_v0 }
  0x24   :  { %168 = vmatpush3.xpose.msra.mxu0 %v40_v6 }
  0x25   :  { %169 = vmatprep.subr.mxu0 %v245_v0 }
  0x28   :  { %170 = vmatpush3.xpose.msra.mxu0 %v39_v7 }
  0x29   :  { %171 = vmatprep.subr.mxu0 %v245_v0 }
  0x2c   :  { %172 = vmatpush3.xpose.msra.mxu0 %v38_v8 }
  0x2d   :  { %173 = vmatprep.subr.mxu0 %v245_v0 }
  0x30   :  { %174 = vmatpush3.xpose.msra.mxu0 %v37_v9 }
  0x31   :  { %175 = vmatprep.subr.mxu0 %v245_v0 }
  0x34   :  { %176 = vmatpush3.xpose.msra.mxu0 %v36_v10 }
  0x35   :  { %177 = vmatprep.subr.mxu0 %v245_v0 }
  0x38   :  { %178 = vmatpush3.xpose.msra.mxu0 %v35_v11 }
  0x39   :  { %179 = vmatprep.subr.mxu0 %v245_v0 }
  0x3c   :  { %180 = vmatpush3.xpose.msra.mxu0 %v34_v12 }
  0x3d   :  { %181 = vmatprep.subr.mxu0 %v245_v0 }
  0x40   :  { %182 = vmatpush3.xpose.msra.mxu0 %v33_v13 }
  0x41   :  { %183 = vmatprep.subr.mxu0 %v245_v0 }
  0x44   :  { %184 = vmatpush3.xpose.msra.mxu0 %v32_v14 }
  0x45   :  { %185 = vmatprep.subr.mxu0 %v245_v0 }
  0x48   :  { %186 = vmatpush3.xpose.msra.mxu0 %v31_v15 }
  0x49   :  { %187 = vmatprep.subr.mxu0 %v245_v0 }
  0x4c   :  { %188 = vmatpush3.xpose.msra.mxu0 %v30_v16 }
  0x4f   :  { %190 = vmatmul.mubr.f32.vlgmr.msra.gmra.mxu0 %v29_v17 }
 0x10f   :  { %v119_v19 = vpop.f32.mrf.mxu0 }
 0x110   :  { %v120_v20 = vadd.f32 %v139_v18, %v119_v19 }
 0x111   :  { %v191_v21 = vpop.f32.mrf.mxu0 }
 0x112   :  { %123 = vst [vmem:[#allocation5] sm:$0xff] %v120_v20 }
 0x113   :  { %229 = shalt.err (!%p226_p9)
}
 0x114   :  { %133 = dma.vmem_to_hbm [thread:$0]  %s131_s23, 128, %s283_s3, [#allocation4]  }
 0x115   :  { %240 = dma.done.wait [#allocation4], 128  }
 0x116   :  { %241 = vsyncadd [#allocation4], 4294967168 }
 0x117   :  { %137 = vsyncpa [#allocation3], 1 }
 0x118   :  { %138 = vsyncpa [#allocation4], 1 }

</bundles_post_ra>
